<compile_context>
chip_gen: v6e
topology: v6e:2x2x1
jax: 0.10.0
libtpu: 0.0.40
codegen_flags: <defaults>
</compile_context>

<pallas_src>
import hashlib

import jax
import jax.numpy as jnp
from jax.experimental import pallas as pl
from jax.experimental.pallas import tpu as pltpu

# ----------------------------- configuration --------------------------------
LAT_C = 4        # latent channels (SD latent space has 4 channels)
IMG_C = 3        # output image channels
HIDDEN = 32      # hidden width of the synthetic denoiser MLP
TXT_D = 32       # synthetic text-embedding dimension
H = W = 16       # spatial size of the (small) synthetic latent / image
GUIDANCE = 15.0  # guidance_scale = 15, as in the reference module
NUM_STEPS = 4    # synthetic diffusion steps

# TODO(synk): the pretrained CLIP tokenizer/encoder, UNet and VAE weights of
# 'runwayml/stable-diffusion-v1-5' cannot be loaded here; they are replaced by
# deterministic synthetic parameters with the same computational structure
# (conditioned eps-prediction + CFG + scheduler step + latent decode).


# ------------------------------ Pallas kernel --------------------------------
def _fused_sd_kernel(sched_ref, x_ref, w1x_ref, b1c_ref, b1u_ref,
                     w2_ref, b2_ref, wdec_ref, bdec_ref, img_ref):
    """Fused denoising loop (NUM_STEPS steps, CFG scale 15) + latent decode.

    Channels-first, lane-dense layout: x is (LAT_C, TILE_M), TILE_M % 128 == 0.
    The latent tile stays resident across all steps; only the decoded
    (IMG_C, TILE_M) image is written back to HBM.
    """
    x = x_ref[...]                      # (LAT_C, TM)      f32
    w1x = w1x_ref[...]                  # (HIDDEN, LAT_C)
    w2 = w2_ref[...]                    # (LAT_C, HIDDEN)
    b1c = b1c_ref[...]                  # (HIDDEN, 1)  = (b1 + cond   @ w1t).T (hoisted)
    b1u = b1u_ref[...]                  # (HIDDEN, 1)  = (b1 + uncond @ w1t).T (hoisted)
    b2 = b2_ref[...]                    # (LAT_C, 1)

    for t in range(NUM_STEPS):          # static unroll; single compile total
        pre = jnp.dot(w1x, x, preferred_element_type=jnp.float32)     # (HID, TM)
        h_c = jnp.maximum(pre + b1c, 0.0)
        h_u = jnp.maximum(pre + b1u, 0.0)
        # Classifier-free guidance folded before the (linear) second layer:
        #   eps_u + g*(eps_c - eps_u) == w2 @ (h_u + g*(h_c - h_u)) + b2
        h = h_u + GUIDANCE * (h_c - h_u)
        eps = jnp.dot(w2, h, preferred_element_type=jnp.float32) + b2  # (C, TM)
        alpha = sched_ref[t]            # SMEM scalars: no baked-in per-step consts
        sigma = sched_ref[NUM_STEPS + t]
        x = alpha * x - sigma * eps     # simple DDIM-like scheduler update

    y = jnp.dot(wdec_ref[...], x, preferred_element_type=jnp.float32) + bdec_ref[...]
    img_ref[...] = jax.nn.sigmoid(y)    # ToTensor-style values in [0, 1]


# ------------------------------ wrapper --------------------------------------
def run_fused_pipeline(x_t, sched, tparams, tile_m):
    """x_t: (LAT_C, M) latents, lane-dense. Returns (IMG_C, M) image in [0,1]."""
    _, m = x_t.shape
    assert m % tile_m == 0 and tile_m % 128 == 0
    full = lambda i: (0, 0)
    return pl.pallas_call(
        _fused_sd_kernel,
        out_shape=jax.ShapeDtypeStruct((IMG_C, m), jnp.float32),
        grid=(m // tile_m,),
        in_specs=[
            pl.BlockSpec(memory_space=pltpu.MemorySpace.SMEM),   # alphas/sigmas
            pl.BlockSpec((LAT_C, tile_m), lambda i: (0, i)),     # latents tile
            pl.BlockSpec((HIDDEN, LAT_C), full),                 # w1x_T
            pl.BlockSpec((HIDDEN, 1), full),                     # b1 + cond @ w1t
            pl.BlockSpec((HIDDEN, 1), full),                     # b1 + uncond @ w1t
            pl.BlockSpec((LAT_C, HIDDEN), full),                 # w2_T
            pl.BlockSpec((LAT_C, 1), full),                      # b2
            pl.BlockSpec((IMG_C, LAT_C), full),                  # wdec_T
            pl.BlockSpec((IMG_C, 1), full),                      # bdec
        ],
        out_specs=pl.BlockSpec((IMG_C, tile_m), lambda i: (0, i)),
        compiler_params=pltpu.CompilerParams(
            # >= 2 parallel tiles so the grid can shard across v7x's two TCs.
            dimension_semantics=("parallel",),
        ),
    )(sched, x_t, tparams["w1x_T"], tparams["b1c"], tparams["b1u"],
      tparams["w2_T"], tparams["b2_col"], tparams["wdec_T"], tparams["bdec_col"])


# ------------------------ deterministic parameter init ------------------------
def init_params(key):
    k = jax.random.split(key, 4)
    s = 0.1
    return {
        "w1x": s * jax.random.normal(k[0], (LAT_C, HIDDEN), jnp.float32),
        "w1t": s * jax.random.normal(k[1], (TXT_D, HIDDEN), jnp.float32),
        "b1": jnp.zeros((1, HIDDEN), jnp.float32),
        "w2": s * jax.random.normal(k[2], (HIDDEN, LAT_C), jnp.float32),
        "b2": jnp.zeros((1, LAT_C), jnp.float32),
        "wdec": s * jax.random.normal(k[3], (LAT_C, IMG_C), jnp.float32),
        "bdec": jnp.zeros((1, IMG_C), jnp.float32),
    }


def prompt_embedding(prompt: str):
    """Deterministic synthetic text embedding derived from the prompt string."""
    seed = int.from_bytes(hashlib.sha256(prompt.encode()).digest()[:4], "little")
    return jax.random.normal(jax.random.PRNGKey(seed), (1, TXT_D), jnp.float32)


# ----------------------------- forward pass -----------------------------------
def stable_diffusion_forward(batch: int, pos_prompt: str, neg_prompt: str, key):
    batchsize = int(batch * 0.25)                 # as in the reference module
    assert batchsize >= 1, "batch must be >= 4 so that batchsize = int(batch*0.25) >= 1"

    params = init_params(jax.random.PRNGKey(0))
    cond = prompt_embedding(pos_prompt)
    uncond = prompt_embedding(neg_prompt)

    # Hoist the text-conditioning matmuls out of the kernel: b1 + text @ w1t is
    # invariant across pixels and diffusion steps, so it becomes a per-prompt bias.
    tparams = {
        "w1x_T": jnp.asarray(params["w1x"].T),                       # (HIDDEN, LAT_C)
        "b1c": jnp.asarray((params["b1"] + cond @ params["w1t"]).T),    # (HIDDEN, 1)
        "b1u": jnp.asarray((params["b1"] + uncond @ params["w1t"]).T),  # (HIDDEN, 1)
        "w2_T": jnp.asarray(params["w2"].T),                         # (LAT_C, HIDDEN)
        "b2_col": jnp.asarray(params["b2"].T),                       # (LAT_C, 1)
        "wdec_T": jnp.asarray(params["wdec"].T),                     # (IMG_C, LAT_C)
        "bdec_col": jnp.asarray(params["bdec"].T),                   # (IMG_C, 1)
    }

    # Initial latents (NCHW, like the SD pipeline), then channels-first
    # lane-dense flatten: (LAT_C, M) with M = batchsize * H * W (multiple of 128).
    latents = jax.random.normal(key, (batchsize, LAT_C, H, W), jnp.float32)
    x_t = jnp.transpose(latents, (1, 0, 2, 3)).reshape(LAT_C, -1)
    m = x_t.shape[1]
    assert m % 128 == 0, "M = batchsize * H * W must be a multiple of 128"

    # Prefer a 2-way split of the lane axis (keeps both v7x TensorCores busy);
    # each tile must stay a multiple of 128 lanes and divide M exactly.
    tile_m = m // 2 if (m // 2) % 128 == 0 else m

    # Scheduler constants live in SMEM (read inside the fused kernel).
    alphas = jnp.linspace(0.95, 0.999, NUM_STEPS, dtype=jnp.float32)
    sigmas = jnp.linspace(0.30, 0.02, NUM_STEPS, dtype=jnp.float32)
    sched = jnp.concatenate([alphas, sigmas])                        # (2*NUM_STEPS,)

    img_flat = run_fused_pipeline(x_t, sched, tparams, tile_m)       # (IMG_C, M)
    img = img_flat.reshape(IMG_C, batchsize, H, W)
    return jnp.transpose(img, (1, 0, 2, 3))       # NCHW, like torch.stack([ToTensor(...)])


# --------------------------------- main ---------------------------------------
if __name__ == "__main__":
    batch = 8                      # -> batchsize = 2 generated images
    pos_prompt = "a photo of a dog in a park"
    neg_prompt = "blurry, low quality"

    key = jax.random.PRNGKey(0)
    images = stable_diffusion_forward(batch, pos_prompt, neg_prompt, key)
    images = jax.block_until_ready(images)

    assert images.shape == (int(batch * 0.25), IMG_C, H, W), images.shape
    assert bool(jnp.all(jnp.isfinite(images)))
    assert bool(jnp.all((images >= 0.0) & (images <= 1.0)))
    print("KERNEL_OK")
</pallas_src>

<mosaic_0001>
module attributes {stable_mosaic.version = 11 : i64} {
  func.func @_fused_sd_kernel(%arg0: i32, %arg1: memref<8xf32, #tpu.memory_space<smem>>, %arg2: memref<4x256xf32, #tpu.memory_space<vmem>>, %arg3: memref<32x4xf32, #tpu.memory_space<vmem>>, %arg4: memref<32x1xf32, #tpu.memory_space<vmem>>, %arg5: memref<32x1xf32, #tpu.memory_space<vmem>>, %arg6: memref<4x32xf32, #tpu.memory_space<vmem>>, %arg7: memref<4x1xf32, #tpu.memory_space<vmem>>, %arg8: memref<3x4xf32, #tpu.memory_space<vmem>>, %arg9: memref<3x1xf32, #tpu.memory_space<vmem>>, %arg10: memref<3x256xf32, #tpu.memory_space<vmem>>) attributes {dimension_semantics = [#tpu.dimension_semantics<parallel>], iteration_bounds = array<i64: 2>, scalar_prefetch = 0 : i64, scratch_operands = 0 : i64, tpu.core_type = #tpu.core_type<tc>, window_params = [{transform_indices = @transform_0, window_bounds = array<i64: 8>}, {transform_indices = @transform_1, window_bounds = array<i64: 4, 256>}, {pipeline_mode = #tpu.pipeline_mode<synchronous>, transform_indices = @transform_2, window_bounds = array<i64: 32, 4>}, {pipeline_mode = #tpu.pipeline_mode<synchronous>, transform_indices = @transform_3, window_bounds = array<i64: 32, 1>}, {pipeline_mode = #tpu.pipeline_mode<synchronous>, transform_indices = @transform_4, window_bounds = array<i64: 32, 1>}, {pipeline_mode = #tpu.pipeline_mode<synchronous>, transform_indices = @transform_5, window_bounds = array<i64: 4, 32>}, {pipeline_mode = #tpu.pipeline_mode<synchronous>, transform_indices = @transform_6, window_bounds = array<i64: 4, 1>}, {pipeline_mode = #tpu.pipeline_mode<synchronous>, transform_indices = @transform_7, window_bounds = array<i64: 3, 4>}, {pipeline_mode = #tpu.pipeline_mode<synchronous>, transform_indices = @transform_8, window_bounds = array<i64: 3, 1>}, {transform_indices = @transform_9, window_bounds = array<i64: 3, 256>}]} {
    %c0 = arith.constant 0 : index
    %c0_0 = arith.constant 0 : index
    %0 = vector.load %arg2[%c0, %c0_0] : memref<4x256xf32, #tpu.memory_space<vmem>>, vector<4x256xf32>
    %c0_1 = arith.constant 0 : index
    %c0_2 = arith.constant 0 : index
    %1 = vector.load %arg3[%c0_1, %c0_2] : memref<32x4xf32, #tpu.memory_space<vmem>>, vector<32x4xf32>
    %c0_3 = arith.constant 0 : index
    %c0_4 = arith.constant 0 : index
    %2 = vector.load %arg6[%c0_3, %c0_4] : memref<4x32xf32, #tpu.memory_space<vmem>>, vector<4x32xf32>
    %c0_5 = arith.constant 0 : index
    %c0_6 = arith.constant 0 : index
    %3 = vector.load %arg4[%c0_5, %c0_6] : memref<32x1xf32, #tpu.memory_space<vmem>>, vector<32x1xf32>
    %c0_7 = arith.constant 0 : index
    %c0_8 = arith.constant 0 : index
    %4 = vector.load %arg5[%c0_7, %c0_8] : memref<32x1xf32, #tpu.memory_space<vmem>>, vector<32x1xf32>
    %c0_9 = arith.constant 0 : index
    %c0_10 = arith.constant 0 : index
    %5 = vector.load %arg7[%c0_9, %c0_10] : memref<4x1xf32, #tpu.memory_space<vmem>>, vector<4x1xf32>
    %cst = arith.constant dense<0.000000e+00> : vector<32x256xf32>
    %6 = tpu.matmul %1, %0, %cst {dimension_numbers = #tpu.dot_dimension_numbers<[1], [0], [0], [1], [0, 0, 1, 1], [], []>} : vector<32x4xf32>, vector<4x256xf32>, vector<32x256xf32> -> vector<32x256xf32>
    %7 = vector.broadcast %3 : vector<32x1xf32> to vector<32x256xf32>
    %8 = arith.addf %6, %7 : vector<32x256xf32>
    %cst_11 = arith.constant 0.000000e+00 : f32
    %9 = vector.broadcast %cst_11 : f32 to vector<32x256xf32>
    %10 = arith.maximumf %8, %9 : vector<32x256xf32>
    %11 = vector.broadcast %4 : vector<32x1xf32> to vector<32x256xf32>
    %12 = arith.addf %6, %11 : vector<32x256xf32>
    %cst_12 = arith.constant 0.000000e+00 : f32
    %13 = vector.broadcast %cst_12 : f32 to vector<32x256xf32>
    %14 = arith.maximumf %12, %13 : vector<32x256xf32>
    %15 = arith.subf %10, %14 : vector<32x256xf32>
    %cst_13 = arith.constant 1.500000e+01 : f32
    %16 = vector.broadcast %cst_13 : f32 to vector<32x256xf32>
    %17 = arith.mulf %16, %15 : vector<32x256xf32>
    %18 = arith.addf %14, %17 : vector<32x256xf32>
    %cst_14 = arith.constant dense<0.000000e+00> : vector<4x256xf32>
    %19 = tpu.matmul %2, %18, %cst_14 {dimension_numbers = #tpu.dot_dimension_numbers<[1], [0], [0], [1], [0, 0, 1, 1], [], []>} : vector<4x32xf32>, vector<32x256xf32>, vector<4x256xf32> -> vector<4x256xf32>
    %20 = vector.broadcast %5 : vector<4x1xf32> to vector<4x256xf32>
    %21 = arith.addf %19, %20 : vector<4x256xf32>
    %c0_15 = arith.constant 0 : index
    %22 = memref.load %arg1[%c0_15] : memref<8xf32, #tpu.memory_space<smem>>
    %c4 = arith.constant 4 : index
    %23 = memref.load %arg1[%c4] : memref<8xf32, #tpu.memory_space<smem>>
    %24 = vector.broadcast %22 : f32 to vector<4x256xf32>
    %25 = arith.mulf %24, %0 : vector<4x256xf32>
    %26 = vector.broadcast %23 : f32 to vector<4x256xf32>
    %27 = arith.mulf %26, %21 : vector<4x256xf32>
    %28 = arith.subf %25, %27 : vector<4x256xf32>
    %cst_16 = arith.constant dense<0.000000e+00> : vector<32x256xf32>
    %29 = tpu.matmul %1, %28, %cst_16 {dimension_numbers = #tpu.dot_dimension_numbers<[1], [0], [0], [1], [0, 0, 1, 1], [], []>} : vector<32x4xf32>, vector<4x256xf32>, vector<32x256xf32> -> vector<32x256xf32>
    %30 = vector.broadcast %3 : vector<32x1xf32> to vector<32x256xf32>
    %31 = arith.addf %29, %30 : vector<32x256xf32>
    %cst_17 = arith.constant 0.000000e+00 : f32
    %32 = vector.broadcast %cst_17 : f32 to vector<32x256xf32>
    %33 = arith.maximumf %31, %32 : vector<32x256xf32>
    %34 = vector.broadcast %4 : vector<32x1xf32> to vector<32x256xf32>
    %35 = arith.addf %29, %34 : vector<32x256xf32>
    %cst_18 = arith.constant 0.000000e+00 : f32
    %36 = vector.broadcast %cst_18 : f32 to vector<32x256xf32>
    %37 = arith.maximumf %35, %36 : vector<32x256xf32>
    %38 = arith.subf %33, %37 : vector<32x256xf32>
    %cst_19 = arith.constant 1.500000e+01 : f32
    %39 = vector.broadcast %cst_19 : f32 to vector<32x256xf32>
    %40 = arith.mulf %39, %38 : vector<32x256xf32>
    %41 = arith.addf %37, %40 : vector<32x256xf32>
    %cst_20 = arith.constant dense<0.000000e+00> : vector<4x256xf32>
    %42 = tpu.matmul %2, %41, %cst_20 {dimension_numbers = #tpu.dot_dimension_numbers<[1], [0], [0], [1], [0, 0, 1, 1], [], []>} : vector<4x32xf32>, vector<32x256xf32>, vector<4x256xf32> -> vector<4x256xf32>
    %43 = vector.broadcast %5 : vector<4x1xf32> to vector<4x256xf32>
    %44 = arith.addf %42, %43 : vector<4x256xf32>
    %c1 = arith.constant 1 : index
    %45 = memref.load %arg1[%c1] : memref<8xf32, #tpu.memory_space<smem>>
    %c5 = arith.constant 5 : index
    %46 = memref.load %arg1[%c5] : memref<8xf32, #tpu.memory_space<smem>>
    %47 = vector.broadcast %45 : f32 to vector<4x256xf32>
    %48 = arith.mulf %47, %28 : vector<4x256xf32>
    %49 = vector.broadcast %46 : f32 to vector<4x256xf32>
    %50 = arith.mulf %49, %44 : vector<4x256xf32>
    %51 = arith.subf %48, %50 : vector<4x256xf32>
    %cst_21 = arith.constant dense<0.000000e+00> : vector<32x256xf32>
    %52 = tpu.matmul %1, %51, %cst_21 {dimension_numbers = #tpu.dot_dimension_numbers<[1], [0], [0], [1], [0, 0, 1, 1], [], []>} : vector<32x4xf32>, vector<4x256xf32>, vector<32x256xf32> -> vector<32x256xf32>
    %53 = vector.broadcast %3 : vector<32x1xf32> to vector<32x256xf32>
    %54 = arith.addf %52, %53 : vector<32x256xf32>
    %cst_22 = arith.constant 0.000000e+00 : f32
    %55 = vector.broadcast %cst_22 : f32 to vector<32x256xf32>
    %56 = arith.maximumf %54, %55 : vector<32x256xf32>
    %57 = vector.broadcast %4 : vector<32x1xf32> to vector<32x256xf32>
    %58 = arith.addf %52, %57 : vector<32x256xf32>
    %cst_23 = arith.constant 0.000000e+00 : f32
    %59 = vector.broadcast %cst_23 : f32 to vector<32x256xf32>
    %60 = arith.maximumf %58, %59 : vector<32x256xf32>
    %61 = arith.subf %56, %60 : vector<32x256xf32>
    %cst_24 = arith.constant 1.500000e+01 : f32
    %62 = vector.broadcast %cst_24 : f32 to vector<32x256xf32>
    %63 = arith.mulf %62, %61 : vector<32x256xf32>
    %64 = arith.addf %60, %63 : vector<32x256xf32>
    %cst_25 = arith.constant dense<0.000000e+00> : vector<4x256xf32>
    %65 = tpu.matmul %2, %64, %cst_25 {dimension_numbers = #tpu.dot_dimension_numbers<[1], [0], [0], [1], [0, 0, 1, 1], [], []>} : vector<4x32xf32>, vector<32x256xf32>, vector<4x256xf32> -> vector<4x256xf32>
    %66 = vector.broadcast %5 : vector<4x1xf32> to vector<4x256xf32>
    %67 = arith.addf %65, %66 : vector<4x256xf32>
    %c2 = arith.constant 2 : index
    %68 = memref.load %arg1[%c2] : memref<8xf32, #tpu.memory_space<smem>>
    %c6 = arith.constant 6 : index
    %69 = memref.load %arg1[%c6] : memref<8xf32, #tpu.memory_space<smem>>
    %70 = vector.broadcast %68 : f32 to vector<4x256xf32>
    %71 = arith.mulf %70, %51 : vector<4x256xf32>
    %72 = vector.broadcast %69 : f32 to vector<4x256xf32>
    %73 = arith.mulf %72, %67 : vector<4x256xf32>
    %74 = arith.subf %71, %73 : vector<4x256xf32>
    %cst_26 = arith.constant dense<0.000000e+00> : vector<32x256xf32>
    %75 = tpu.matmul %1, %74, %cst_26 {dimension_numbers = #tpu.dot_dimension_numbers<[1], [0], [0], [1], [0, 0, 1, 1], [], []>} : vector<32x4xf32>, vector<4x256xf32>, vector<32x256xf32> -> vector<32x256xf32>
    %76 = vector.broadcast %3 : vector<32x1xf32> to vector<32x256xf32>
    %77 = arith.addf %75, %76 : vector<32x256xf32>
    %cst_27 = arith.constant 0.000000e+00 : f32
    %78 = vector.broadcast %cst_27 : f32 to vector<32x256xf32>
    %79 = arith.maximumf %77, %78 : vector<32x256xf32>
    %80 = vector.broadcast %4 : vector<32x1xf32> to vector<32x256xf32>
    %81 = arith.addf %75, %80 : vector<32x256xf32>
    %cst_28 = arith.constant 0.000000e+00 : f32
    %82 = vector.broadcast %cst_28 : f32 to vector<32x256xf32>
    %83 = arith.maximumf %81, %82 : vector<32x256xf32>
    %84 = arith.subf %79, %83 : vector<32x256xf32>
    %cst_29 = arith.constant 1.500000e+01 : f32
    %85 = vector.broadcast %cst_29 : f32 to vector<32x256xf32>
    %86 = arith.mulf %85, %84 : vector<32x256xf32>
    %87 = arith.addf %83, %86 : vector<32x256xf32>
    %cst_30 = arith.constant dense<0.000000e+00> : vector<4x256xf32>
    %88 = tpu.matmul %2, %87, %cst_30 {dimension_numbers = #tpu.dot_dimension_numbers<[1], [0], [0], [1], [0, 0, 1, 1], [], []>} : vector<4x32xf32>, vector<32x256xf32>, vector<4x256xf32> -> vector<4x256xf32>
    %89 = vector.broadcast %5 : vector<4x1xf32> to vector<4x256xf32>
    %90 = arith.addf %88, %89 : vector<4x256xf32>
    %c3 = arith.constant 3 : index
    %91 = memref.load %arg1[%c3] : memref<8xf32, #tpu.memory_space<smem>>
    %c7 = arith.constant 7 : index
    %92 = memref.load %arg1[%c7] : memref<8xf32, #tpu.memory_space<smem>>
    %93 = vector.broadcast %91 : f32 to vector<4x256xf32>
    %94 = arith.mulf %93, %74 : vector<4x256xf32>
    %95 = vector.broadcast %92 : f32 to vector<4x256xf32>
    %96 = arith.mulf %95, %90 : vector<4x256xf32>
    %97 = arith.subf %94, %96 : vector<4x256xf32>
    %c0_31 = arith.constant 0 : index
    %c0_32 = arith.constant 0 : index
    %98 = vector.load %arg8[%c0_31, %c0_32] : memref<3x4xf32, #tpu.memory_space<vmem>>, vector<3x4xf32>
    %cst_33 = arith.constant dense<0.000000e+00> : vector<3x256xf32>
    %99 = tpu.matmul %98, %97, %cst_33 {dimension_numbers = #tpu.dot_dimension_numbers<[1], [0], [0], [1], [0, 0, 1, 1], [], []>} : vector<3x4xf32>, vector<4x256xf32>, vector<3x256xf32> -> vector<3x256xf32>
    %c0_34 = arith.constant 0 : index
    %c0_35 = arith.constant 0 : index
    %100 = vector.load %arg9[%c0_34, %c0_35] : memref<3x1xf32, #tpu.memory_space<vmem>>, vector<3x1xf32>
    %101 = vector.broadcast %100 : vector<3x1xf32> to vector<3x256xf32>
    %102 = arith.addf %99, %101 : vector<3x256xf32>
    %103 = arith.negf %102 : vector<3x256xf32>
    %104 = math.exp %103 : vector<3x256xf32>
    %cst_36 = arith.constant 1.000000e+00 : f32
    %105 = vector.broadcast %cst_36 : f32 to vector<3x256xf32>
    %106 = arith.addf %105, %104 : vector<3x256xf32>
    %107 = arith.divf %105, %106 : vector<3x256xf32>
    %c0_37 = arith.constant 0 : index
    %c0_38 = arith.constant 0 : index
    %108 = vector.load %arg10[%c0_37, %c0_38] : memref<3x256xf32, #tpu.memory_space<vmem>>, vector<3x256xf32>
    tpu.vector_store %arg10[%c0_37, %c0_38], %107 {strides = array<i32>} : memref<3x256xf32, #tpu.memory_space<vmem>>, vector<3x256xf32>,
    return
  }
  func.func @transform_0(%arg0: i32) -> i32 {
    %c0_i32 = arith.constant 0 : i32
    %c0_i32_0 = arith.constant 0 : i32
    return %c0_i32 : i32
  }
  func.func @transform_1(%arg0: i32) -> (i32, i32) {
    %c0_i32 = arith.constant 0 : i32
    %c0_i32_0 = arith.constant 0 : i32
    return %c0_i32, %arg0 : i32, i32
  }
  func.func @transform_2(%arg0: i32) -> (i32, i32) {
    %c0_i32 = arith.constant 0 : i32
    %c0_i32_0 = arith.constant 0 : i32
    %c0_i32_1 = arith.constant 0 : i32
    return %c0_i32, %c0_i32_0 : i32, i32
  }
  func.func @transform_3(%arg0: i32) -> (i32, i32) {
    %c0_i32 = arith.constant 0 : i32
    %c0_i32_0 = arith.constant 0 : i32
    %c0_i32_1 = arith.constant 0 : i32
    return %c0_i32, %c0_i32_0 : i32, i32
  }
  func.func @transform_4(%arg0: i32) -> (i32, i32) {
    %c0_i32 = arith.constant 0 : i32
    %c0_i32_0 = arith.constant 0 : i32
    %c0_i32_1 = arith.constant 0 : i32
    return %c0_i32, %c0_i32_0 : i32, i32
  }
  func.func @transform_5(%arg0: i32) -> (i32, i32) {
    %c0_i32 = arith.constant 0 : i32
    %c0_i32_0 = arith.constant 0 : i32
    %c0_i32_1 = arith.constant 0 : i32
    return %c0_i32, %c0_i32_0 : i32, i32
  }
  func.func @transform_6(%arg0: i32) -> (i32, i32) {
    %c0_i32 = arith.constant 0 : i32
    %c0_i32_0 = arith.constant 0 : i32
    %c0_i32_1 = arith.constant 0 : i32
    return %c0_i32, %c0_i32_0 : i32, i32
  }
  func.func @transform_7(%arg0: i32) -> (i32, i32) {
    %c0_i32 = arith.constant 0 : i32
    %c0_i32_0 = arith.constant 0 : i32
    %c0_i32_1 = arith.constant 0 : i32
    return %c0_i32, %c0_i32_0 : i32, i32
  }
  func.func @transform_8(%arg0: i32) -> (i32, i32) {
    %c0_i32 = arith.constant 0 : i32
    %c0_i32_0 = arith.constant 0 : i32
    %c0_i32_1 = arith.constant 0 : i32
    return %c0_i32, %c0_i32_0 : i32, i32
  }
  func.func @transform_9(%arg0: i32) -> (i32, i32) {
    %c0_i32 = arith.constant 0 : i32
    %c0_i32_0 = arith.constant 0 : i32
    return %c0_i32, %arg0 : i32, i32
  }
}

</mosaic_0001>

<bundles_post_ra>
// kernel: tpu_custom_call.1
= control target key start
LH: loop header
LB: loop body
LE: loop exit
PB: predicated region body
PF: predicated region fallthrough
CT: control target
= control target key end

     0   :  { %14 = vsyncpa [#allocation4], 0  ;;  %s2153_s0 = inlined_call_operand.vmem [shape: f32[8], index: 0, kind: input, shape index: {}]   ;;  %s2154_s1 = inlined_call_operand.vmem [shape: f32[4,512], index: 1, kind: input, shape index: {}]   ;;  %s2155_s2 = inlined_call_operand.vmem [shape: f32[32,4], index: 2, kind: input, shape index: {}]   ;;  %s2156_s3 = inlined_call_operand.vmem [shape: f32[32,1], index: 3, kind: input, shape index: {}]   ;;  %s2157_s4 = inlined_call_operand.vmem [shape: f32[32,1], index: 4, kind: input, shape index: {}]   ;;  %s2158_s5 = inlined_call_operand.vmem [shape: f32[4,32], index: 5, kind: input, shape index: {}]   ;;  %s2159_s6 = inlined_call_operand.vmem [shape: f32[4,1], index: 6, kind: input, shape index: {}]   ;;  %s2160_s7 = inlined_call_operand.vmem [shape: f32[3,4], index: 7, kind: input, shape index: {}]   ;;  %s2161_s8 = inlined_call_operand.vmem [shape: f32[3,1], index: 8, kind: input, shape index: {}]   ;;  %s2162_s9 = inlined_call_operand.hbm [shape: f32[3,512], index: 9, kind: output, shape index: {}]  }
   0x1   :  { %15 = vsyncpa [#allocation3], 0 }
   0x2   :  { %17 = vsyncpa [#allocation3 + $0x1], 0  ;;  %s1805_s30 = smov 0   ;;  %s1807_s10 = smov 0  }
   0x3   :  { %s1809_s11 = smov 0   ;;  %s1811_s12 = smov 0  }
   0x4 LB: > { %s1826_s13 = sadd.s32 4294967295, %s1749_s12   ;;  %s1552_s14 = sadd.s32 4294967294, %s1749_s12   ;;  %s1749_s12 = sphi %s1811_s12, %s2169_s12   ;;  %s1745_s11 = sphi %s1809_s11, %s2168_s11   ;;  %s1741_s10 = sphi %s1807_s10, %s2167_s10   ;;  %s1737_s30 = sphi %s1805_s30, %s2166_s30  }
   0x5   : > { %s1830_s15 = sadd.s32 1, %s1749_s12   ;;  %s224_s16 = sadd.s32 1, %s1745_s11 }
   0x6   : > { %s221_s17 = ssub.s32 %s1749_s12, %s1830_s15  ;;  %p234_p0 = scmp.ne.s32.totalorder %s1745_s11, %s1741_s10 }
   0x7   : > { %p222_p1 = scmp.eq.s32.totalorder %s221_s17, 0  ;;  %p235_p2 = scmp.eq.s32.totalorder %s1826_s13, 1 }
   0x8   : > { %p240_p3 = scmp.ne.s32.totalorder %s1741_s10, %s1737_s30  ;;  %p241_p4 = scmp.eq.s32.totalorder %s1552_s14, 1 }
   0x9   : > { %s1841_s18 = scalar_select %p222_p1, %s1745_s11, %s224_s16  }
   0xa   : > { %p1843_p5 = por %p235_p2, %p234_p0  ;;  %p1847_p6 = por %p241_p4, %p240_p3 }
   0xb   : > { %p1553_p7 = scmp.ge.s32.totalorder %s1749_s12, 1  ;;  %p248_p8 = scmp.lt.s32.totalorder %s1749_s12, 3 }
   0xc   : > { %p1621_p9 = scmp.eq.s32.totalorder %s1826_s13, 0  ;;  %s261_s24 = sshll.u32 %s2153_s0, 4  ;;  %s262_s24 = int_to_ptr.vmem [resolvable:$true] %s261_s24 }
   0xd   : > { %p1854_p10 = pnand %p1553_p7, %p248_p8  ;;  %s1670_s25 = scalar_lea.vmem %s262_s24, 16 }
   0xe   : > { %p1671_p13 = scmp.ne.s32.totalorder %s262_s24, %s1670_s25  ;;  %p1678_p3 = scmp.lt.s32.totalorder %s262_s24, %s262_s24 }
   0xf   : > { %p1613_p11 = pneg %p1854_p10  ;;  %p1679_p4 = scmp.lt.s32.totalorder %s1670_s25, %s1670_s25 }
  0x11   : > { %p1614_p12 = pnand %p1621_p9, %p1613_p11  ;;  %p1680_p7 = por %p1679_p4, %p1678_p3 }
  0x13   : > { %p1672_p0 = pneg %p1614_p12 }
  0x15   : > { %p1673_p1 = pnand %p1672_p0, %p1671_p13 }
  0x17   : > { %p1674_p2 = pneg %p1673_p1 }
  0x19   : > { %p1681_p8 = pnand %p1680_p7, %p1674_p2 }
  0x1b   : > { %1684 = shalt.err (!%p1681_p8)
}
  0x1c   : > { %s1751_s26 = smov [#allocation2]   ;;  %304 = sbr.rel (%p1854_p10) target bundleno = 2019 (0x7e3), region = 56 }
  0x1d   : > { %1616 = dma.vmem_to_smem (!%p1614_p12), %s262_s24, 16, %s1751_s26, [#allocation4]  }
  0x21   : > { %1728 = dma.done.wait (%p1621_p9), [#allocation4], 16  }
  0x22   : > { %1730 = vsyncadd (%p1621_p9), [#allocation4], 4294967280 }
  0x23   : > { %310 = sfence }
  0x24   : > { %s1559_s27 = sshll.u32 %s1826_s13, 1  ;;  %v1752_v0 = vmov 0.0   ;;  %v1753_v1 = vmov 0   ;;  %v357_v2 = vld [vmem:[%s2156_s3 + $0x18] sm:$0xff]  ;;  %v356_v3 = vld [vmem:[%s2156_s3 + $0x10] sm:$0xff]  ;;  %vm378_vm0 = vcmask 1043456  }
  0x25   : > { %p342_p11 = scmp.lt.s32.totalorder %s1559_s27, 3  ;;  %447 = vmatprep.mubr.f32.mxu0 %v1752_v0  ;;  %641 = vmatprep.mubr.f32.mxu1 %v1752_v0  ;;  %v361_v4 = vld [vmem:[%s2157_s4 + $0x18] sm:$0xff]  ;;  %v360_v5 = vld [vmem:[%s2157_s4 + $0x10] sm:$0xff]  ;;  %v359_v8 = vld [vmem:[%s2157_s4 + $0x8] sm:$0xff]  ;;  %vm365_vm1 = vcmask 31744   ;;  %vm573_vm2 = vcmask 261120  }
  0x26   : > { %1660 = vset.pattern.permute.xlu1 %v1753_v1  ;;  %1659 = vset.pattern.permute.xlu0 %v1753_v1  ;;  %v1899_v9 = vld [vmem:[%s2155_s2] sm:$0xff]  ;;  %v355_v10 = vld [vmem:[%s2156_s3 + $0x8] sm:$0xff]  ;;  %v1930_v15 = vld [vmem:[%s2155_s2 + $0x10] sm:$0xff]  ;;  %s648_s26 = sld [smem:[#allocation2]]  ;;  %s1754_s22 = smov [#allocation5]  }
  0x27   : > { %s2171_s27 = smov (!%p342_p11, %s1559_s27), 3  ;;  %489 = vperm.xlu0 %1659, %v357_v2   ;;  %484 = vperm.xlu1 %1660, %v356_v3   ;;  %v358_v11 = vld [vmem:[%s2157_s4] sm:$0xff]  ;;  %v1916_v12 = vld [vmem:[%s2155_s2 + $0x8] sm:$0xff]  ;;  %v1941_v17 = vld [vmem:[%s2155_s2 + $0x18] sm:$0xff]  ;;  %s1577_s29 = sld [smem:[#allocation2 + $0x5]] }
  0x28   : > { %s1560_s24 = sshll.u32 %s2171_s27, 2  ;;  %v354_v13 = vld [vmem:[%s2156_s3] sm:$0xff]  ;;  %s1576_s14 = sld [smem:[#allocation2 + $0x1]] }
  0x29   : > { %s345_s28 = scalar_lea.vmem %s2154_s1, %s1560_s24  ;;  %v1363_v14 = vld [vmem:[%s2161_s8] sm:$0x7]  ;;  %s1586_s16 = sld [smem:[#allocation2 + $0x6]] }
  0x2a   : > { %v1889_v6 = vld [vmem:[%s345_s28] sm:$0xff]  ;;  %s1568_s28 = sld [smem:[#allocation2 + $0x4]]  ;;  %s338_s24 = sand.u32 1, %s1741_s10  }
  0x2b   : > { %525 = vperm.xlu0 %1659, %v361_v4   ;;  %520 = vperm.xlu1 %1660, %v360_v5   ;;  %v364_v7 = vcombine.high %v1889_v6, %v1889_v6  ;;  %v362_v16 = vld [vmem:[%s2159_s6] sm:$0xf]  ;;  %s1585_s17 = sld [smem:[#allocation2 + $0x2]]  ;;  %s1558_s25 = sshll.u32 %s338_s24, 3 }
  0x2c   : > { %s1595_s27 = sld [smem:[#allocation2 + $0x7]]  ;;  %s1689_s23 = sshll.u32 %s1754_s22, 4  ;;  %s1690_s23 = int_to_ptr.vmem [resolvable:$false] %s1689_s23 }
  0x2d   : > { %1561 = vmatprep.subr.msk.mxu0 %vm378_vm0, %v364_v7  ;;  %s1594_s21 = sld [smem:[#allocation2 + $0x3]] }
  0x2e   : > { %1562 = vmatpush1.msk.msra.mxu0 %vm378_vm0, %v1889_v6 }
  0x2f   : > { %515 = vperm.xlu1 %1660, %v359_v8   ;;  %1563 = vmatmul.mubr.msk.f32.vlgmr.msra.gmra.mxu0 %vm365_vm1, %v1899_v9 }
  0x30   : > { %479 = vperm.xlu0 %1659, %v355_v10   ;;  %453 = vmatprep.mubr.f32.mxu0 %v1752_v0 }
  0x33   : > { %510 = vperm.xlu1 %1660, %v358_v11   ;;  %1564 = vmatmul.mubr.msk.f32.gmra.mxu0 %vm365_vm1, %v1916_v12 }
  0x34   : > { %474 = vperm.xlu0 %1659, %v354_v13   ;;  %459 = vmatprep.mubr.f32.mxu0 %v1752_v0 }
  0x37   : > { %1366 = vperm.xlu1 %1660, %v1363_v14   ;;  %1565 = vmatmul.mubr.msk.f32.gmra.mxu0 %vm365_vm1, %v1930_v15 }
  0x38   : > { %570 = vperm.xlu0 %1659, %v362_v16   ;;  %465 = vmatprep.mubr.f32.mxu0 %v1752_v0 }
  0x3b   : > { %1566 = vmatmul.mubr.msk.f32.gmra.mxu0 %vm365_vm1, %v1941_v17 }
  0x3c   : > { %875 = vmatprep.mubr.f32.mxu0 %v1752_v0 }
  0xa2   : > { %v1946_v18 = vpop.permute.xlu0 %489  ;;  %v1948_v19 = vpop.permute.xlu1 %484 }
  0xa6   : > { %v1950_v20 = vpop.permute.xlu0 %525  ;;  %v1952_v21 = vpop.permute.xlu1 %520 }
  0xaa   : > { %v1954_v24 = vpop.permute.xlu1 %515 }
  0xab   : > { %v1956_v25 = vpop.permute.xlu0 %479 }
  0xae   : > { %v1958_v29 = vpop.permute.xlu1 %510 }
  0xaf   : > { %v1960_v30 = vpop.permute.xlu0 %474 }
  0xef   : > { %v449_v22 = vpop.f32.mrf.mxu0 }
  0xf0   : > { %v492_v36 = vadd.f32 %v1960_v30, %v449_v22  ;;  %v528_v37 = vadd.f32 %v1958_v29, %v449_v22 }
  0xf1   : > { %v451_v23 = vpop.f32.mrf.mxu0 }
  0xf2   : > { %v493_v41 = vadd.f32 %v1960_v30, %v451_v23  ;;  %v529_v45 = vadd.f32 %v1958_v29, %v451_v23  ;;  %v500_v3 = vmax.f32 %v492_v36, 0.0  ;;  %v536_v4 = vmax.f32 %v528_v37, 0.0 }
  0xf3   : > { %v455_v26 = vpop.f32.mrf.mxu0 }
  0xf4   : > { %v494_v42 = vadd.f32 %v1956_v25, %v455_v26  ;;  %v530_v43 = vadd.f32 %v1954_v24, %v455_v26  ;;  %v501_v58 = vmax.f32 %v493_v41, 0.0  ;;  %v537_v62 = vmax.f32 %v529_v45, 0.0  ;;  %v1986_v41 = vpop.permute.xlu0 %570 }
  0xf5   : > { %v457_v27 = vpop.f32.mrf.mxu0  ;;  %v544_v22 = vsub.f32 %v500_v3, %v536_v4  ;;  %v652_v45 = vstv %s1568_s28  ;;  %s340_s28 = scalar_lea.vmem [#allocation5], %s1558_s25 }
  0xf6   : > { %v495_v38 = vadd.f32 %v1956_v25, %v457_v27  ;;  %v531_v39 = vadd.f32 %v1954_v24, %v457_v27  ;;  %v502_v59 = vmax.f32 %v494_v42, 0.0  ;;  %v538_v60 = vmax.f32 %v530_v43, 0.0 }
  0xf7   : > { %v461_v28 = vpop.f32.mrf.mxu0  ;;  %v545_v13 = vsub.f32 %v501_v58, %v537_v62 }
  0xf8   : > { %v496_v32 = vadd.f32 %v1948_v19, %v461_v28  ;;  %v532_v33 = vadd.f32 %v1952_v21, %v461_v28  ;;  %v503_v54 = vmax.f32 %v495_v38, 0.0  ;;  %v539_v55 = vmax.f32 %v531_v39, 0.0 }
  0xf9   : > { %v463_v31 = vpop.f32.mrf.mxu0  ;;  %v546_v10 = vsub.f32 %v502_v59, %v538_v60 }
  0xfa   : > { %v497_v34 = vadd.f32 %v1948_v19, %v463_v31  ;;  %v533_v35 = vadd.f32 %v1952_v21, %v463_v31  ;;  %v504_v50 = vmax.f32 %v496_v32, 0.0  ;;  %v540_v51 = vmax.f32 %v532_v33, 0.0 }
  0xfb   : > { %v467_v40 = vpop.f32.mrf.mxu0  ;;  %v547_v7 = vsub.f32 %v503_v54, %v539_v55  ;;  %v554_v28 = vmul.f32 15.0, %v546_v10  ;;  %v553_v32 = vmul.f32 15.0, %v545_v13 }
  0xfc   : > { %v498_v44 = vadd.f32 %v1946_v18, %v467_v40  ;;  %v505_v46 = vmax.f32 %v497_v34, 0.0  ;;  %v541_v47 = vmax.f32 %v533_v35, 0.0  ;;  %v534_v48 = vadd.f32 %v1950_v20, %v467_v40  ;;  %v1981_v40 = vld [vmem:[%s2158_s5] sm:$0xf] }
  0xfd   : > { %v469_v49 = vpop.f32.mrf.mxu0  ;;  %v548_v5 = vsub.f32 %v504_v50, %v540_v51  ;;  %v555_v26 = vmul.f32 15.0, %v547_v7  ;;  %v552_v34 = vmul.f32 15.0, %v544_v22  ;;  %v562_v37 = vadd.f32 %v554_v28, %v538_v60 }
  0xfe   : > { %v506_v52 = vmax.f32 %v498_v44, 0.0  ;;  %v499_v53 = vadd.f32 %v1946_v18, %v469_v49  ;;  %v542_v56 = vmax.f32 %v534_v48, 0.0  ;;  %v535_v57 = vadd.f32 %v1950_v20, %v469_v49 }
  0xff   : > { %v549_v63 = vsub.f32 %v505_v46, %v541_v47  ;;  %v556_v23 = vmul.f32 15.0, %v548_v5  ;;  %v563_v36 = vadd.f32 %v555_v26, %v539_v55  ;;  %v561_v38 = vadd.f32 %v553_v32, %v537_v62 }
 0x100   : > { %v507_v61 = vmax.f32 %v499_v53, 0.0  ;;  %v543_v1 = vmax.f32 %v535_v57, 0.0  ;;  %v550_v2 = vsub.f32 %v506_v52, %v542_v56  ;;  %v560_v39 = vadd.f32 %v552_v34, %v536_v4 }
 0x101   : > { %v557_v14 = vmul.f32 15.0, %v549_v63  ;;  %v564_v35 = vadd.f32 %v556_v23, %v540_v51  ;;  %v650_v44 = vstv %s648_s26  ;;  %s1606_s26 = sshll.u32 %s1826_s13, 7  ;;  %s1691_s13 = scalar_lea.vmem %s1690_s23, 256 }
 0x102   : > { %v551_v8 = vsub.f32 %v507_v61, %v543_v1  ;;  %v558_v11 = vmul.f32 15.0, %v550_v2  ;;  %v651_v48 = vmul.f32 %v650_v44, %v1889_v6 }
 0x103   : > { %v565_v33 = vadd.f32 %v557_v14, %v541_v47 }
 0x104   : > { %v559_v16 = vmul.f32 15.0, %v551_v8  ;;  %v566_v31 = vadd.f32 %v558_v11, %v542_v56 }
 0x106   : > { %v567_v27 = vadd.f32 %v559_v16, %v543_v1 }
 0x108   : > { %601 = vmatprep.subr.mxu1 %v567_v27 }
 0x109   : > { %602 = vmatpush1.msra.mxu1 %v566_v31 }
 0x10a   : > { %603 = vmatprep.subr.mxu1 %v565_v33 }
 0x10b   : > { %604 = vmatpush1.msra.mxu1 %v564_v35 }
 0x10c   : > { %605 = vmatprep.subr.mxu1 %v563_v36 }
 0x10d   : > { %606 = vmatpush1.msra.mxu1 %v562_v37 }
 0x10e   : > { %607 = vmatprep.subr.mxu1 %v561_v38 }
 0x10f   : > { %608 = vmatpush1.msra.mxu1 %v560_v39 }
 0x110   : > { %1567 = vmatmul.mubr.msk.f32.vlgmr.msra.gmra.mxu1 %vm573_vm2, %v1981_v40 }
 0x111   : > { %730 = vmatprep.mubr.f32.mxu1 %v1752_v0 }
 0x1d0   : > { %v643_v42 = vpop.f32.mrf.mxu1 }
 0x1d1   : > { %v644_v43 = vadd.f32 %v643_v42, %v1986_v41 }
 0x1d2   : > { %v645_v46 = vpop.f32.mrf.mxu1 }
 0x1d3   : > { %v646_v47 = vadd.f32 %v645_v46, %v1986_v41  ;;  %v653_v49 = vmul.f32 %v652_v45, %v644_v43 }
 0x1d5   : > { %v654_v50 = vmul.f32 %v652_v45, %v646_v47 }
 0x1d7   : > { %v657_v51 = vcombine.low %v653_v49, %v654_v50 }
 0x1d9   : > { %v1991_v52 = vsub.f32 %v651_v48, %v657_v51 }
 0x1db   : > { %v661_v53 = vcombine.high %v1991_v52, %v1991_v52 }
 0x1dd   : > { %1569 = vmatprep.subr.msk.mxu1 %vm378_vm0, %v661_v53 }
 0x1de   : > { %1570 = vmatpush1.msk.msra.mxu1 %vm378_vm0, %v1991_v52 }
 0x1df   : > { %1571 = vmatmul.mubr.msk.f32.vlgmr.msra.gmra.mxu1 %vm365_vm1, %v1899_v9 }
 0x1e0   : > { %736 = vmatprep.mubr.f32.mxu1 %v1752_v0 }
 0x1e3   : > { %1572 = vmatmul.mubr.msk.f32.gmra.mxu1 %vm365_vm1, %v1916_v12 }
 0x1e4   : > { %742 = vmatprep.mubr.f32.mxu1 %v1752_v0 }
 0x1e7   : > { %1573 = vmatmul.mubr.msk.f32.gmra.mxu1 %vm365_vm1, %v1930_v15 }
 0x1e8   : > { %748 = vmatprep.mubr.f32.mxu1 %v1752_v0 }
 0x1eb   : > { %1574 = vmatmul.mubr.msk.f32.gmra.mxu1 %vm365_vm1, %v1941_v17 }
 0x1ec   : > { %1109 = vmatprep.mubr.f32.mxu1 %v1752_v0 }
 0x29f   : > { %v732_v6 = vpop.f32.mrf.mxu1 }
 0x2a0   : > { %v755_v60 = vadd.f32 %v732_v6, %v1960_v30  ;;  %v771_v1 = vadd.f32 %v732_v6, %v1958_v29 }
 0x2a1   : > { %v734_v54 = vpop.f32.mrf.mxu1 }
 0x2a2   : > { %v756_v2 = vadd.f32 %v734_v54, %v1960_v30  ;;  %v772_v13 = vadd.f32 %v734_v54, %v1958_v29  ;;  %v763_v45 = vmax.f32 %v755_v60, 0.0  ;;  %v779_v46 = vmax.f32 %v771_v1, 0.0 }
 0x2a3   : > { %v738_v55 = vpop.f32.mrf.mxu1 }
 0x2a4   : > { %v757_v7 = vadd.f32 %v738_v55, %v1956_v25  ;;  %v773_v8 = vadd.f32 %v738_v55, %v1954_v24  ;;  %v764_v39 = vmax.f32 %v756_v2, 0.0  ;;  %v780_v42 = vmax.f32 %v772_v13, 0.0 }
 0x2a5   : > { %v740_v56 = vpop.f32.mrf.mxu1  ;;  %v787_v55 = vsub.f32 %v763_v45, %v779_v46 }
 0x2a6   : > { %v758_v3 = vadd.f32 %v740_v56, %v1956_v25  ;;  %v774_v4 = vadd.f32 %v740_v56, %v1954_v24  ;;  %v765_v35 = vmax.f32 %v757_v7, 0.0  ;;  %v781_v36 = vmax.f32 %v773_v8, 0.0 }
 0x2a7   : > { %v744_v57 = vpop.f32.mrf.mxu1  ;;  %v788_v53 = vsub.f32 %v764_v39, %v780_v42  ;;  %v795_v2 = vmul.f32 15.0, %v787_v55 }
 0x2a8   : > { %v759_v58 = vadd.f32 %v744_v57, %v1948_v19  ;;  %v775_v61 = vadd.f32 %v744_v57, %v1952_v21  ;;  %v766_v32 = vmax.f32 %v758_v3, 0.0  ;;  %v782_v33 = vmax.f32 %v774_v4, 0.0 }
 0x2a9   : > { %v746_v59 = vpop.f32.mrf.mxu1  ;;  %v789_v50 = vsub.f32 %v765_v35, %v781_v36 }
 0x2aa   : > { %v760_v62 = vadd.f32 %v746_v59, %v1948_v19  ;;  %v776_v63 = vadd.f32 %v746_v59, %v1952_v21  ;;  %v767_v14 = vmax.f32 %v759_v58, 0.0  ;;  %v783_v26 = vmax.f32 %v775_v61, 0.0 }
 0x2ab   : > { %v750_v5 = vpop.f32.mrf.mxu1  ;;  %v790_v48 = vsub.f32 %v766_v32, %v782_v33  ;;  %v797_v59 = vmul.f32 15.0, %v789_v50 }
 0x2ac   : > { %v761_v10 = vadd.f32 %v750_v5, %v1946_v18  ;;  %v777_v11 = vadd.f32 %v750_v5, %v1950_v20  ;;  %v768_v16 = vmax.f32 %v760_v62, 0.0  ;;  %v784_v22 = vmax.f32 %v776_v63, 0.0 }
 0x2ad   : > { %v752_v23 = vpop.f32.mrf.mxu1  ;;  %v791_v47 = vsub.f32 %v767_v14, %v783_v26  ;;  %v798_v57 = vmul.f32 15.0, %v790_v48  ;;  %v796_v62 = vmul.f32 15.0, %v788_v53  ;;  %v805_v3 = vadd.f32 %v797_v59, %v781_v36 }
 0x2ae   : > { %v769_v27 = vmax.f32 %v761_v10, 0.0  ;;  %v785_v28 = vmax.f32 %v777_v11, 0.0  ;;  %v762_v31 = vadd.f32 %v752_v23, %v1946_v18  ;;  %v778_v34 = vadd.f32 %v752_v23, %v1950_v20 }
 0x2af   : > { %v792_v43 = vsub.f32 %v768_v16, %v784_v22  ;;  %v799_v56 = vmul.f32 15.0, %v791_v47  ;;  %v806_v1 = vadd.f32 %v798_v57, %v782_v33  ;;  %v804_v4 = vadd.f32 %v796_v62, %v780_v42 }
 0x2b0   : > { %v793_v37 = vsub.f32 %v769_v27, %v785_v28  ;;  %v770_v38 = vmax.f32 %v762_v31, 0.0  ;;  %v786_v44 = vmax.f32 %v778_v34, 0.0  ;;  %v803_v5 = vadd.f32 %v795_v2, %v779_v46 }
 0x2b1   : > { %v800_v6 = vmul.f32 15.0, %v792_v43  ;;  %v807_v60 = vadd.f32 %v799_v56, %v783_v26  ;;  %v886_v10 = vstv %s1577_s29  ;;  %v884_v14 = vstv %s1576_s14  ;;  %s1481_s29 = sshll.u32 %s340_s28, 4  ;;  %s1482_s29 = int_to_ptr.vmem [resolvable:$true] %s1481_s29 }
 0x2b2   : > { %v794_v49 = vsub.f32 %v770_v38, %v786_v44  ;;  %v801_v51 = vmul.f32 15.0, %v793_v37  ;;  %v885_v23 = vmul.f32 %v884_v14, %v1991_v52  ;;  %p1692_p13 = scmp.lt.s32.totalorder %s1482_s29, %s1690_s23 }
 0x2b3   : > { %v808_v63 = vadd.f32 %v800_v6, %v784_v22 }
 0x2b4   : > { %v802_v54 = vmul.f32 15.0, %v794_v49  ;;  %v809_v61 = vadd.f32 %v801_v51, %v785_v28 }
 0x2b6   : > { %v810_v58 = vadd.f32 %v802_v54, %v786_v44 }
 0x2b8   : > { %835 = vmatprep.subr.mxu0 %v810_v58 }
 0x2b9   : > { %836 = vmatpush1.msra.mxu0 %v809_v61 }
 0x2ba   : > { %837 = vmatprep.subr.mxu0 %v808_v63 }
 0x2bb   : > { %838 = vmatpush1.msra.mxu0 %v807_v60 }
 0x2bc   : > { %839 = vmatprep.subr.mxu0 %v806_v1 }
 0x2bd   : > { %840 = vmatpush1.msra.mxu0 %v805_v3 }
 0x2be   : > { %841 = vmatprep.subr.mxu0 %v804_v4 }
 0x2bf   : > { %842 = vmatpush1.msra.mxu0 %v803_v5 }
 0x2c0   : > { %1575 = vmatmul.mubr.msk.f32.vlgmr.msra.gmra.mxu0 %vm573_vm2, %v1981_v40 }
 0x2c1   : > { %964 = vmatprep.mubr.f32.mxu0 %v1752_v0 }
 0x380   : > { %v877_v7 = vpop.f32.mrf.mxu0 }
 0x381   : > { %v878_v8 = vadd.f32 %v877_v7, %v1986_v41 }
 0x382   : > { %v879_v11 = vpop.f32.mrf.mxu0 }
 0x383   : > { %v880_v13 = vadd.f32 %v879_v11, %v1986_v41  ;;  %v887_v16 = vmul.f32 %v886_v10, %v878_v8 }
 0x385   : > { %v888_v22 = vmul.f32 %v886_v10, %v880_v13 }
 0x387   : > { %v891_v26 = vcombine.low %v887_v16, %v888_v22 }
 0x389   : > { %v2032_v27 = vsub.f32 %v885_v23, %v891_v26 }
 0x38b   : > { %v895_v28 = vcombine.high %v2032_v27, %v2032_v27 }
 0x38d   : > { %1578 = vmatprep.subr.msk.mxu0 %vm378_vm0, %v895_v28 }
 0x38e   : > { %1579 = vmatpush1.msk.msra.mxu0 %vm378_vm0, %v2032_v27 }
 0x38f   : > { %1580 = vmatmul.mubr.msk.f32.vlgmr.msra.gmra.mxu0 %vm365_vm1, %v1899_v9 }
 0x390   : > { %970 = vmatprep.mubr.f32.mxu0 %v1752_v0 }
 0x393   : > { %1581 = vmatmul.mubr.msk.f32.gmra.mxu0 %vm365_vm1, %v1916_v12 }
 0x394   : > { %976 = vmatprep.mubr.f32.mxu0 %v1752_v0 }
 0x397   : > { %1582 = vmatmul.mubr.msk.f32.gmra.mxu0 %vm365_vm1, %v1930_v15 }
 0x398   : > { %982 = vmatprep.mubr.f32.mxu0 %v1752_v0 }
 0x39b   : > { %1583 = vmatmul.mubr.msk.f32.gmra.mxu0 %vm365_vm1, %v1941_v17 }
 0x39c   : > { %1343 = vmatprep.mubr.f32.mxu0 %v1752_v0 }
 0x44f   : > { %v966_v52 = vpop.f32.mrf.mxu0 }
 0x450   : > { %v989_v37 = vadd.f32 %v966_v52, %v1960_v30  ;;  %v1005_v43 = vadd.f32 %v966_v52, %v1958_v29 }
 0x451   : > { %v968_v31 = vpop.f32.mrf.mxu0 }
 0x452   : > { %v990_v44 = vadd.f32 %v968_v31, %v1960_v30  ;;  %v1006_v53 = vadd.f32 %v968_v31, %v1958_v29  ;;  %v997_v11 = vmax.f32 %v989_v37, 0.0  ;;  %v1013_v13 = vmax.f32 %v1005_v43, 0.0 }
 0x453   : > { %v972_v32 = vpop.f32.mrf.mxu0 }
 0x454   : > { %v991_v48 = vadd.f32 %v972_v32, %v1956_v25  ;;  %v1007_v49 = vadd.f32 %v972_v32, %v1954_v24  ;;  %v998_v5 = vmax.f32 %v990_v44, 0.0  ;;  %v1014_v7 = vmax.f32 %v1006_v53, 0.0 }
 0x455   : > { %v974_v33 = vpop.f32.mrf.mxu0  ;;  %v1021_v32 = vsub.f32 %v997_v11, %v1013_v13 }
 0x456   : > { %v992_v45 = vadd.f32 %v974_v33, %v1956_v25  ;;  %v1008_v46 = vadd.f32 %v974_v33, %v1954_v24  ;;  %v999_v60 = vmax.f32 %v991_v48, 0.0  ;;  %v1015_v1 = vmax.f32 %v1007_v49, 0.0 }
 0x457   : > { %v978_v34 = vpop.f32.mrf.mxu0  ;;  %v1022_v28 = vsub.f32 %v998_v5, %v1014_v7  ;;  %v1029_v44 = vmul.f32 15.0, %v1021_v32 }
 0x458   : > { %v993_v35 = vadd.f32 %v978_v34, %v1948_v19  ;;  %v1009_v38 = vadd.f32 %v978_v34, %v1952_v21  ;;  %v1000_v62 = vmax.f32 %v992_v45, 0.0  ;;  %v1016_v63 = vmax.f32 %v1008_v46, 0.0 }
 0x459   : > { %v980_v36 = vpop.f32.mrf.mxu0  ;;  %v1023_v23 = vsub.f32 %v999_v60, %v1015_v1 }
 0x45a   : > { %v994_v39 = vadd.f32 %v980_v36, %v1948_v19  ;;  %v1010_v42 = vadd.f32 %v980_v36, %v1952_v21  ;;  %v1001_v6 = vmax.f32 %v993_v35, 0.0  ;;  %v1017_v57 = vmax.f32 %v1009_v38, 0.0 }
 0x45b   : > { %v984_v47 = vpop.f32.mrf.mxu0  ;;  %v1024_v16 = vsub.f32 %v1000_v62, %v1016_v63  ;;  %v1031_v36 = vmul.f32 15.0, %v1023_v23 }
 0x45c   : > { %v995_v50 = vadd.f32 %v984_v47, %v1946_v18  ;;  %v1011_v51 = vadd.f32 %v984_v47, %v1950_v20  ;;  %v1002_v54 = vmax.f32 %v994_v39, 0.0  ;;  %v1018_v55 = vmax.f32 %v1010_v42, 0.0 }
 0x45d   : > { %v986_v56 = vpop.f32.mrf.mxu0  ;;  %v1025_v14 = vsub.f32 %v1001_v6, %v1017_v57  ;;  %v1032_v34 = vmul.f32 15.0, %v1024_v16  ;;  %v1030_v39 = vmul.f32 15.0, %v1022_v28  ;;  %v1039_v45 = vadd.f32 %v1031_v36, %v1015_v1 }
 0x45e   : > { %v1003_v58 = vmax.f32 %v995_v50, 0.0  ;;  %v1019_v59 = vmax.f32 %v1011_v51, 0.0  ;;  %v996_v61 = vadd.f32 %v986_v56, %v1946_v18  ;;  %v1012_v2 = vadd.f32 %v986_v56, %v1950_v20 }
 0x45f   : > { %v1026_v8 = vsub.f32 %v1002_v54, %v1018_v55  ;;  %v1033_v33 = vmul.f32 15.0, %v1025_v14  ;;  %v1040_v43 = vadd.f32 %v1032_v34, %v1016_v63  ;;  %v1038_v46 = vadd.f32 %v1030_v39, %v1014_v7 }
 0x460   : > { %v1027_v3 = vsub.f32 %v1003_v58, %v1019_v59  ;;  %v1004_v4 = vmax.f32 %v996_v61, 0.0  ;;  %v1020_v10 = vmax.f32 %v1012_v2, 0.0  ;;  %v1037_v47 = vadd.f32 %v1029_v44, %v1013_v13 }
 0x461   : > { %v1034_v52 = vmul.f32 15.0, %v1026_v8  ;;  %v1041_v37 = vadd.f32 %v1033_v33, %v1017_v57  ;;  %v1120_v50 = vstv %s1586_s16  ;;  %v1118_v6 = vstv %s1585_s17  ;;  %s1479_s17 = scalar_lea.hbm %s2162_s9, %s1606_s26 }
 0x462   : > { %v1028_v22 = vsub.f32 %v1004_v4, %v1020_v10  ;;  %v1035_v26 = vmul.f32 15.0, %v1027_v3  ;;  %v1119_v56 = vmul.f32 %v1118_v6, %v2032_v27 }
 0x463   : > { %v1042_v42 = vadd.f32 %v1034_v52, %v1018_v55 }
 0x464   : > { %v1036_v31 = vmul.f32 15.0, %v1028_v22  ;;  %v1043_v38 = vadd.f32 %v1035_v26, %v1019_v59 }
 0x466   : > { %v1044_v35 = vadd.f32 %v1036_v31, %v1020_v10 }
 0x468   : > { %1069 = vmatprep.subr.mxu1 %v1044_v35 }
 0x469   : > { %1070 = vmatpush1.msra.mxu1 %v1043_v38 }
 0x46a   : > { %1071 = vmatprep.subr.mxu1 %v1042_v42 }
 0x46b   : > { %1072 = vmatpush1.msra.mxu1 %v1041_v37 }
 0x46c   : > { %1073 = vmatprep.subr.mxu1 %v1040_v43 }
 0x46d   : > { %1074 = vmatpush1.msra.mxu1 %v1039_v45 }
 0x46e   : > { %1075 = vmatprep.subr.mxu1 %v1038_v46 }
 0x46f   : > { %1076 = vmatpush1.msra.mxu1 %v1037_v47 }
 0x470   : > { %1584 = vmatmul.mubr.msk.f32.vlgmr.msra.gmra.mxu1 %vm573_vm2, %v1981_v40 }
 0x471   : > { %1198 = vmatprep.mubr.f32.mxu1 %v1752_v0 }
 0x530   : > { %v1111_v48 = vpop.f32.mrf.mxu1 }
 0x531   : > { %v1112_v49 = vadd.f32 %v1111_v48, %v1986_v41 }
 0x532   : > { %v1113_v51 = vpop.f32.mrf.mxu1 }
 0x533   : > { %v1114_v53 = vadd.f32 %v1113_v51, %v1986_v41  ;;  %v1121_v54 = vmul.f32 %v1120_v50, %v1112_v49 }
 0x535   : > { %v1122_v55 = vmul.f32 %v1120_v50, %v1114_v53 }
 0x537   : > { %v1125_v57 = vcombine.low %v1121_v54, %v1122_v55 }
 0x539   : > { %v2073_v58 = vsub.f32 %v1119_v56, %v1125_v57 }
 0x53b   : > { %v1129_v59 = vcombine.high %v2073_v58, %v2073_v58 }
 0x53d   : > { %1587 = vmatprep.subr.msk.mxu1 %vm378_vm0, %v1129_v59 }
 0x53e   : > { %1588 = vmatpush1.msk.msra.mxu1 %vm378_vm0, %v2073_v58 }
 0x53f   : > { %1589 = vmatmul.mubr.msk.f32.vlgmr.msra.gmra.mxu1 %vm365_vm1, %v1899_v9 }
 0x540   : > { %1204 = vmatprep.mubr.f32.mxu1 %v1752_v0 }
 0x543   : > { %1590 = vmatmul.mubr.msk.f32.gmra.mxu1 %vm365_vm1, %v1916_v12 }
 0x544   : > { %1210 = vmatprep.mubr.f32.mxu1 %v1752_v0 }
 0x547   : > { %1591 = vmatmul.mubr.msk.f32.gmra.mxu1 %vm365_vm1, %v1930_v15 }
 0x548   : > { %1216 = vmatprep.mubr.f32.mxu1 %v1752_v0 }
 0x54b   : > { %1592 = vmatmul.mubr.msk.f32.gmra.mxu1 %vm365_vm1, %v1941_v17 }
 0x5ff   : > { %v1200_v27 = vpop.f32.mrf.mxu1 }
 0x600   : > { %v1223_v12 = vadd.f32 %v1200_v27, %v1960_v30  ;;  %v1239_v4 = vadd.f32 %v1200_v27, %v1958_v29 }
 0x601   : > { %v1202_v61 = vpop.f32.mrf.mxu1 }
 0x602   : > { %v1224_v17 = vadd.f32 %v1202_v61, %v1960_v30  ;;  %v1231_v42 = vmax.f32 %v1223_v12, 0.0  ;;  %v1247_v44 = vmax.f32 %v1239_v4, 0.0 }
 0x603   : > { %v1206_v62 = vpop.f32.mrf.mxu1 }
 0x604   : > { %v1225_v10 = vadd.f32 %v1206_v62, %v1956_v25  ;;  %v1241_v11 = vadd.f32 %v1206_v62, %v1954_v24  ;;  %v1232_v36 = vmax.f32 %v1224_v17, 0.0  ;;  %v1255_v50 = vsub.f32 %v1231_v42, %v1247_v44 }
 0x605   : > { %v1208_v63 = vpop.f32.mrf.mxu1 }
 0x606   : > { %v1226_v5 = vadd.f32 %v1208_v63, %v1956_v25  ;;  %v1242_v7 = vadd.f32 %v1208_v63, %v1954_v24  ;;  %v1233_v24 = vmax.f32 %v1225_v10, 0.0  ;;  %v1249_v33 = vmax.f32 %v1241_v11, 0.0 }
 0x607   : > { %v1212_v9 = vpop.f32.mrf.mxu1  ;;  %v1263_v57 = vmul.f32 15.0, %v1255_v50 }
 0x608   : > { %v1227_v2 = vadd.f32 %v1212_v9, %v1948_v19  ;;  %v1243_v1 = vadd.f32 %v1212_v9, %v1952_v21  ;;  %v1234_v31 = vmax.f32 %v1226_v5, 0.0  ;;  %v1250_v32 = vmax.f32 %v1242_v7, 0.0 }
 0x609   : > { %v1214_v60 = vpop.f32.mrf.mxu1  ;;  %v1257_v46 = vsub.f32 %v1233_v24, %v1249_v33  ;;  %v1271_v63 = vadd.f32 %v1263_v57, %v1247_v44 }
 0x60a   : > { %v1228_v3 = vadd.f32 %v1214_v60, %v1948_v19  ;;  %v1244_v15 = vadd.f32 %v1214_v60, %v1952_v21  ;;  %v1240_v19 = vadd.f32 %v1202_v61, %v1958_v29  ;;  %v1235_v21 = vmax.f32 %v1227_v2, 0.0 }
 0x60b   : > { %v1218_v8 = vpop.f32.mrf.mxu1  ;;  %v1251_v30 = vmax.f32 %v1243_v1, 0.0  ;;  %v1258_v43 = vsub.f32 %v1234_v31, %v1250_v32  ;;  %v1265_v6 = vmul.f32 15.0, %v1257_v46  ;;  %v1354_v60 = vstv %s1595_s27  ;;  %s1467_s27 = scalar_lea.sflag [#allocation3], %s338_s24 }
 0x60c   : > { %v1229_v13 = vadd.f32 %v1218_v8, %v1946_v18  ;;  %v1245_v14 = vadd.f32 %v1218_v8, %v1950_v20  ;;  %v1236_v16 = vmax.f32 %v1228_v3, 0.0  ;;  %v1252_v22 = vmax.f32 %v1244_v15, 0.0 }
 0x60d   : > { %v1220_v23 = vpop.f32.mrf.mxu1  ;;  %v1248_v38 = vmax.f32 %v1240_v19, 0.0  ;;  %v1259_v37 = vsub.f32 %v1235_v21, %v1251_v30  ;;  %v1266_v51 = vmul.f32 15.0, %v1258_v43  ;;  %v1273_v61 = vadd.f32 %v1265_v6, %v1249_v33 }
 0x60e   : > { %v1237_v26 = vmax.f32 %v1229_v13, 0.0  ;;  %v1253_v28 = vmax.f32 %v1245_v14, 0.0  ;;  %v1230_v52 = vadd.f32 %v1220_v23, %v1946_v18  ;;  %v1246_v25 = vadd.f32 %v1220_v23, %v1950_v20 }
 0x60f   : > { %v1260_v29 = vsub.f32 %v1236_v16, %v1252_v22  ;;  %v1256_v18 = vsub.f32 %v1232_v36, %v1248_v38  ;;  %v1267_v20 = vmul.f32 15.0, %v1259_v37  ;;  %v1274_v27 = vadd.f32 %v1266_v51, %v1250_v32 }
 0x610   : > { %v1261_v34 = vsub.f32 %v1237_v26, %v1253_v28  ;;  %v1238_v35 = vmax.f32 %v1230_v52, 0.0  ;;  %v1254_v39 = vmax.f32 %v1246_v25, 0.0  ;;  %v1352_v3 = vstv %s1594_s21  ;;  %s1685_s21 = scalar_lea.vmem %s1482_s29, 128 }
 0x611   : > { %v1268_v48 = vmul.f32 15.0, %v1260_v29  ;;  %v1264_v55 = vmul.f32 15.0, %v1256_v18  ;;  %v1275_v59 = vadd.f32 %v1267_v20, %v1251_v30  ;;  %v1353_v17 = vmul.f32 %v1352_v3, %v2073_v58  ;;  %p1686_p9 = scmp.ne.s32.totalorder %s1482_s29, %s1685_s21  ;;  %p1693_p0 = scmp.lt.s32.totalorder %s1691_s13, %s1685_s21 }
 0x612   : > { %v1262_v45 = vsub.f32 %v1238_v35, %v1254_v39  ;;  %v1269_v47 = vmul.f32 15.0, %v1261_v34 }
 0x613   : > { %v1276_v56 = vadd.f32 %v1268_v48, %v1252_v22  ;;  %v1272_v62 = vadd.f32 %v1264_v55, %v1248_v38  ;;  %p1687_p10 = pnand %p1686_p9, %p1843_p5  ;;  %p1694_p1 = por %p1693_p0, %p1692_p13 }
 0x614   : > { %v1270_v49 = vmul.f32 15.0, %v1262_v45  ;;  %v1277_v54 = vadd.f32 %v1269_v47, %v1253_v28 }
 0x615   : > { %p1688_p12 = pneg %p1687_p10 }
 0x616   : > { %v1278_v53 = vadd.f32 %v1270_v49, %v1254_v39 }
 0x617   : > { %p1695_p2 = pnand %p1694_p1, %p1688_p12 }
 0x618   : > { %1303 = vmatprep.subr.mxu0 %v1278_v53 }
 0x619   : > { %1304 = vmatpush1.msra.mxu0 %v1277_v54 }
 0x61a   : > { %1305 = vmatprep.subr.mxu0 %v1276_v56 }
 0x61b   : > { %1306 = vmatpush1.msra.mxu0 %v1275_v59 }
 0x61c   : > { %1307 = vmatprep.subr.mxu0 %v1274_v27 }
 0x61d   : > { %1308 = vmatpush1.msra.mxu0 %v1273_v61 }
 0x61e   : > { %1309 = vmatprep.subr.mxu0 %v1272_v62 }
 0x61f   : > { %1310 = vmatpush1.msra.mxu0 %v1271_v63 }
 0x620   : > { %1593 = vmatmul.mubr.msk.f32.vlgmr.msra.gmra.mxu0 %vm573_vm2, %v1981_v40  ;;  %v1367_v40 = vpop.permute.xlu1 %1366 }
 0x621   : > { %1442 = vmatprep.mubr.f32.mxu0 %v1752_v0  ;;  %v1362_v0 = vld [vmem:[%s2160_s7] sm:$0x7] }
 0x6e0   : > { %v1345_v9 = vpop.f32.mrf.mxu0 }
 0x6e1   : > { %v1346_v2 = vadd.f32 %v1345_v9, %v1986_v41 }
 0x6e2   : > { %v1347_v12 = vpop.f32.mrf.mxu0 }
 0x6e3   : > { %v1348_v1 = vadd.f32 %v1347_v12, %v1986_v41  ;;  %v1355_v15 = vmul.f32 %v1354_v60, %v1346_v2 }
 0x6e5   : > { %v1356_v4 = vmul.f32 %v1354_v60, %v1348_v1 }
 0x6e7   : > { %v1359_v5 = vcombine.low %v1355_v15, %v1356_v4 }
 0x6e9   : > { %v1361_v7 = vsub.f32 %v1353_v17, %v1359_v5 }
 0x6eb   : > { %v1370_v8 = vcombine.high %v1361_v7, %v1361_v7 }
 0x6ed   : > { %1596 = vmatprep.subr.msk.mxu0 %vm378_vm0, %v1370_v8 }
 0x6ee   : > { %1597 = vmatpush1.msk.msra.mxu0 %vm378_vm0, %v1361_v7 }
 0x6ef   : > { %1598 = vmatmul.mubr.msk.f32.vlgmr.msra.gmra.mxu0 %vm365_vm1, %v1362_v0 }
 0x7af   : > { %v1444_v41 = vpop.f32.mrf.mxu0 }
 0x7b0   : > { %v1445_v10 = vadd.f32 %v1444_v41, %v1367_v40 }
 0x7b1   : > { %v1446_v11 = vpop.f32.mrf.mxu0 }
 0x7b2   : > { %v1599_v58 = vmul.f32 -1.442695, %v1445_v10  ;;  %v1447_v13 = vadd.f32 %v1446_v11, %v1367_v40 }
 0x7b4   : > { %1662 = vpow2.f32 %v1599_v58  ;;  %v1600_v14 = vmul.f32 -1.442695, %v1447_v13 }
 0x7b6   : > { %1664 = vpow2.f32 %v1600_v14 }
 0x7c1   : > { %v1663_v19 = vpop.eup %1662 }
 0x7c2   : > { %v1455_v21 = vadd.f32 1.0, %v1663_v19 }
 0x7c3   : > { %v1665_v16 = vpop.eup %1664 }
 0x7c4   : > { %v1456_v22 = vadd.f32 1.0, %v1665_v16  ;;  %1666 = vrcp.f32 %v1455_v21 }
 0x7c6   : > { %1668 = vrcp.f32 %v1456_v22 }
 0x7d1   : > { %v1667_v23 = vpop.eup %1666 }
 0x7d3   : > { %v1669_v30 = vpop.eup %1668 }
 0x7d4   : > { %v1463_v26 = vcombine.low %v1667_v23, %v1669_v30 }
 0x7d6   : > { %1465 = vst [vmem:[%s340_s28] sm:$0x77] %v1463_v26 }
 0x7d7   : > { %1698 = shalt.err (!%p1695_p2)
}
 0x7d8   : > { %s1699_s25 = scalar_lea.hbm %s1479_s17, 128  ;;  %s1703_s28 = scalar_lea.hbm %s2162_s9, 256 }
 0x7d9   : > { %p1700_p3 = scmp.ne.s32.totalorder %s1479_s17, %s1699_s25  ;;  %p1704_p8 = scmp.lt.s32.totalorder %s1479_s17, %s2162_s9 }
 0x7da   : > { %p1705_p11 = scmp.lt.s32.totalorder %s1703_s28, %s1699_s25 }
 0x7db   : > { %p1701_p4 = pnand %p1700_p3, %p1843_p5 }
 0x7dc   : > { %p1706_p9 = por %p1705_p11, %p1704_p8 }
 0x7dd   : > { %p1702_p7 = pneg %p1701_p4 }
 0x7df   : > { %p1707_p10 = pnand %p1706_p9, %p1702_p7 }
 0x7e1   : > { %1710 = shalt.err (!%p1707_p10)
}
 0x7e2   : > { %1611 = dma.vmem_to_hbm [thread:$0]  (%p1843_p5), %s1482_s29, 128, %s1479_s17, %s1467_s27  }
 0x7e3 PF: > { %p1623_p12 = scmp.ge.s32.totalorder %s1749_s12, 2  ;;  %s1493_s21 = sand.u32 1, %s1737_s30  }
 0x7e4   : > { %s1494_s22 = scalar_lea.sflag [#allocation3], %s1493_s21 }
 0x7e5   : > { %p1618_p13 = pnand %p1623_p12, %p1847_p6 }
 0x7e7   : > { %p1619_p0 = pneg %p1618_p13 }
 0x7e9   : > { %1732 = dma.done.wait (%p1619_p0), %s1494_s22, 128  }
 0x7ea   : > { %1734 = vsyncadd (%p1619_p0), %s1494_s22, 4294967168  ;;  %p20_p1 = scmp.ge.s32.totalorder %s1830_s15, 4   ;;  %s2166_s30 = smov %s1741_s10 }
 0x7eb   : > { %s2167_s10 = smov %s1745_s11  ;;  %s2168_s11 = smov %s1841_s18 }
 0x7ec   : > { %s2169_s12 = smov %s1830_s15  ;;  %22 = sbr.rel (!%p20_p1) target bundleno = 4 (0x4), region = 96 }
 0x7f1   :  { %1499 = vsyncpa [#allocation3], 1 }
 0x7f2   :  { %1501 = vsyncpa [#allocation3 + $0x1], 1 }
 0x7f3   :  { %1502 = vsyncpa [#allocation4], 1 }
 0x7f4   :  { %1504 = vsyncpa [#allocation4 + $0x1], 1 }

</bundles_post_ra>
